<compile_context>
chip_gen: v7x
topology: tpu7x:2x2x1
jax: 0.10.0
libtpu: 0.0.40
codegen_flags: <defaults>
</compile_context>

<pallas_src>
import functools

import jax
import jax.numpy as jnp
from jax.experimental import pallas as pl
from jax.experimental.pallas import tpu as pltpu


# ---------------- Pallas kernel: fused 3-layer MLP + softmax / log-softmax ----------------

def _fused_mlp_softmax_kernel(s_ref, a_ref, w1_ref, b1_ref, w2_ref, b2_ref,
                              w3_ref, b3_ref, out_s_ref, out_a_ref,
                              *, n_concepts, pad):
    # Stack the state and action row-tiles in-register: both branches use the
    # same weights (reference routes `a` through state_net), so we get one set
    # of weight loads and doubled MXU row occupancy, with no HBM concat.
    tile_b = s_ref.shape[0]
    x = jnp.concatenate([s_ref[...], a_ref[...]], axis=0)     # (2*tile_b, s_dim)
    rows = 2 * tile_b

    # Matmuls: cast activations to the weight dtype (bf16) for the MXU,
    # accumulate in f32.  All elementwise math stays in f32.
    h1 = jnp.dot(x.astype(w1_ref.dtype), w1_ref[...],
                 preferred_element_type=jnp.float32) + b1_ref[...]
    h1 = jnp.maximum(h1, 0.0)
    h2 = jnp.dot(h1.astype(w2_ref.dtype), w2_ref[...],
                 preferred_element_type=jnp.float32) + b2_ref[...]
    h2 = jnp.maximum(h2, 0.0)
    logits = jnp.dot(h2.astype(w3_ref.dtype), w3_ref[...],
                     preferred_element_type=jnp.float32) + b3_ref[...]

    # Numerically-stable log-softmax; softmax derived as exp(log_softmax) so the
    # two outputs are exactly consistent and rows sum to 1 (no approx reciprocal).
    m = jnp.max(logits, axis=-1, keepdims=True)
    shifted = logits - m
    ssum = jnp.sum(jnp.exp(shifted), axis=-1, keepdims=True)
    logp = shifted - jnp.log(ssum)
    p = jnp.exp(logp)                      # extra exp runs on the otherwise-idle EUP slot

    # Build one lane-dense slab [p | 0-pad | logp | 0-pad] of width 2*pad (>=256
    # lanes) and store it with a single full, unmasked write per output.
    if pad > n_concepts:
        zpad = jnp.zeros((rows, pad - n_concepts), jnp.float32)
        slab = jnp.concatenate([p, zpad, logp, zpad], axis=-1)
    else:
        slab = jnp.concatenate([p, logp], axis=-1)

    out_s_ref[...] = slab[:tile_b].astype(out_s_ref.dtype)
    out_a_ref[...] = slab[tile_b:].astype(out_a_ref.dtype)


# ---------------- Wrapper ----------------

def _round_up(x, m):
    return ((x + m - 1) // m) * m


def _choose_tile_b(batch, cap=1024):
    """Per review: never force multiple grid steps for small batches (each step
    costs ~0.35us of fixed overhead and buys nothing here since the weights are
    already VMEM-resident).  Use one full-batch block for B <= cap; otherwise
    the largest multiple-of-8 divisor of B that is <= cap."""
    if batch <= cap:
        return batch
    best = batch
    t = 8
    while t <= cap:
        if batch % t == 0:
            best = t
        t += 8
    return best


def sa_concept_forward(s, a, params, *, tile_b=None):
    """Fused forward for both SA_concept_Net branches (shared state_net weights).
    Returns (PS_s, log_PS_s, PA_a, log_PA_a)."""
    w1, b1, w2, b2, w3, b3 = params
    B, s_dim = s.shape
    assert a.shape == (B, s_dim)
    H = w1.shape[1]
    C = w3.shape[1]

    pad = max(128, _round_up(C, 128))      # lane-dense output padding
    out_w = 2 * pad

    if tile_b is None:
        tile_b = _choose_tile_b(B)
    assert B % tile_b == 0
    grid = (B // tile_b,)

    full = lambda i: (0, 0)
    row = lambda i: (i, 0)

    kernel = functools.partial(_fused_mlp_softmax_kernel, n_concepts=C, pad=pad)

    # Advisory cost estimate for XLA scheduling around this small call.
    R = 2 * B
    flops = 2 * R * (s_dim * H + H * H + H * C)
    transcendentals = R * (2 * C + 1)                 # exp(shifted), exp(logp), log(ssum)
    bytes_accessed = (int(s.size + a.size) * s.dtype.itemsize
                      + sum(int(p.size) * p.dtype.itemsize for p in params)
                      + 2 * B * out_w * 4)
    cost = pl.CostEstimate(flops=flops, transcendentals=transcendentals,
                           bytes_accessed=bytes_accessed)

    # Explicit VMEM budget: double-buffered activation/output tiles + resident
    # weights + f32 temporaries, with headroom.  Safe on all gens (<= 64 MiB).
    weight_bytes = sum(int(p.size) * p.dtype.itemsize for p in params)
    act_bytes = 2 * (2 * tile_b * s_dim * 4) + 2 * (2 * tile_b * out_w * 4)
    tmp_bytes = 6 * (2 * tile_b) * max(H, out_w) * 4
    vmem_limit = min(max(act_bytes + weight_bytes + tmp_bytes + (4 << 20), 16 << 20),
                     64 << 20)

    # "parallel" vs "arbitrary" is a measured no-op on single-TC chips; with a
    # single grid step it is irrelevant.
    # TODO(synk): for large B on v7x, use pltpu.CORE_PARALLEL on this axis (or an
    # explicit core_map) to engage the second TensorCore.
    dim_sem = ("arbitrary",) if grid[0] == 1 else ("parallel",)

    out_s, out_a = pl.pallas_call(
        kernel,
        out_shape=(jax.ShapeDtypeStruct((B, out_w), jnp.float32),
                   jax.ShapeDtypeStruct((B, out_w), jnp.float32)),
        grid_spec=pltpu.PrefetchScalarGridSpec(
            num_scalar_prefetch=0,
            grid=grid,
            in_specs=[
                pl.BlockSpec((tile_b, s_dim), row),        # s rows
                pl.BlockSpec((tile_b, s_dim), row),        # a rows
                # Weights/biases: constant index maps -> DMA'd once, VMEM-resident.
                pl.BlockSpec((s_dim, H), full),
                pl.BlockSpec((1, H), full),
                pl.BlockSpec((H, H), full),
                pl.BlockSpec((1, H), full),
                pl.BlockSpec((H, C), full),
                pl.BlockSpec((1, C), full),
            ],
            out_specs=[pl.BlockSpec((tile_b, out_w), row),
                       pl.BlockSpec((tile_b, out_w), row)],
        ),
        compiler_params=pltpu.CompilerParams(
            dimension_semantics=dim_sem,
            vmem_limit_bytes=int(vmem_limit)),
        cost_estimate=cost,
    )(s, a, w1, b1, w2, b2, w3, b3)

    return (out_s[:, :C], out_s[:, pad:pad + C],
            out_a[:, :C], out_a[:, pad:pad + C])


# ---------------- Parameter construction (deterministic) ----------------

def init_softmax_policy_params(key, in_dim, hidden, n_concepts,
                               weight_dtype=jnp.bfloat16):
    """PyTorch-style uniform(-1/sqrt(fan_in), 1/sqrt(fan_in)) init.
    Weights stored in `weight_dtype` (bf16 default halves weight DMA);
    biases kept in f32."""
    k1, k2, k3 = jax.random.split(key, 3)

    def lin(k, fan_in, fan_out):
        bound = 1.0 / jnp.sqrt(fan_in)
        kw, kb = jax.random.split(k)
        w = jax.random.uniform(kw, (fan_in, fan_out), jnp.float32, -bound, bound)
        b = jax.random.uniform(kb, (1, fan_out), jnp.float32, -bound, bound)
        return w.astype(weight_dtype), b

    w1, b1 = lin(k1, in_dim, hidden)
    w2, b2 = lin(k2, hidden, hidden)
    w3, b3 = lin(k3, hidden, n_concepts)
    return (w1, b1, w2, b2, w3, b3)


class SAConceptNet:
    """JAX/Pallas equivalent of SA_concept_Net."""

    def __init__(self, s_dim, n_state_concepts, a_dim, n_action_concepts,
                 hidden=128, key=jax.random.PRNGKey(42)):
        ks, ka = jax.random.split(key)
        self.s_dim = s_dim
        self.state_params = init_softmax_policy_params(ks, s_dim, hidden, n_state_concepts)
        # action_net is initialized (as in __init__) but — matching the reference
        # forward, which calls state_net on both inputs — it is never used.
        self.action_params = init_softmax_policy_params(ka, a_dim, hidden, n_action_concepts)

    def __call__(self, s, a):
        # Reference forward routes `a` through state_net, which requires matching dims.
        assert a.shape[1] == self.s_dim, \
            "SA_concept_Net reference routes `a` through state_net: a_dim must equal s_dim"
        return sa_concept_forward(s, a, self.state_params)


# ---------------- Pure-JAX reference (for correctness check) ----------------

def _reference_forward(x, params):
    w1, b1, w2, b2, w3, b3 = params
    w1, w2, w3 = (w.astype(jnp.float32) for w in (w1, w2, w3))
    h1 = jnp.maximum(x @ w1 + b1, 0.0)
    h2 = jnp.maximum(h1 @ w2 + b2, 0.0)
    logits = h2 @ w3 + b3
    return jax.nn.softmax(logits, axis=-1), jax.nn.log_softmax(logits, axis=-1)


# ---------------- Main ----------------

if __name__ == "__main__":
    B = 8
    S_DIM = 32
    A_DIM = 32          # must equal S_DIM (reference routes `a` through state_net)
    N_STATE_CONCEPTS = 8
    N_ACTION_CONCEPTS = 8
    HIDDEN = 128

    key = jax.random.PRNGKey(0)
    ks, ka = jax.random.split(key)
    s = jax.random.normal(ks, (B, S_DIM), jnp.float32)
    a = jax.random.normal(ka, (B, A_DIM), jnp.float32)

    net = SAConceptNet(S_DIM, N_STATE_CONCEPTS, A_DIM, N_ACTION_CONCEPTS, hidden=HIDDEN)
    PS_s, log_PS_s, PA_a, log_PA_a = net(s, a)
    jax.block_until_ready((PS_s, log_PS_s, PA_a, log_PA_a))

    # sanity: shapes, probabilities sum to 1, log-probs consistent.
    # Exact softmax path (p = exp(log_softmax)) -> tight internal tolerances.
    assert PS_s.shape == (B, N_STATE_CONCEPTS)
    assert PA_a.shape == (B, N_STATE_CONCEPTS)
    assert jnp.allclose(jnp.sum(PS_s, axis=-1), 1.0, atol=1e-5)
    assert jnp.allclose(jnp.sum(PA_a, axis=-1), 1.0, atol=1e-5)
    assert jnp.allclose(jnp.exp(log_PS_s), PS_s, atol=1e-5)
    assert jnp.allclose(jnp.exp(log_PA_a), PA_a, atol=1e-5)

    # compare against pure-JAX f32 reference (bf16 weights + bf16 activation casts in kernel)
    ref_p_s, ref_lp_s = _reference_forward(s, net.state_params)
    ref_p_a, ref_lp_a = _reference_forward(a, net.state_params)
    assert jnp.allclose(PS_s, ref_p_s, atol=1e-2)
    assert jnp.allclose(PA_a, ref_p_a, atol=1e-2)
    assert jnp.allclose(log_PS_s, ref_lp_s, atol=2e-2)
    assert jnp.allclose(log_PA_a, ref_lp_a, atol=2e-2)

    print("KERNEL_OK")
</pallas_src>

<mosaic_0001>
module attributes {stable_mosaic.version = 11 : i64} {
  func.func @_fused_mlp_softmax_kernel(%arg0: i32, %arg1: memref<8x32xf32, #tpu.memory_space<vmem>>, %arg2: memref<8x32xf32, #tpu.memory_space<vmem>>, %arg3: memref<32x128xbf16, #tpu.memory_space<vmem>>, %arg4: memref<1x128xf32, #tpu.memory_space<vmem>>, %arg5: memref<128x128xbf16, #tpu.memory_space<vmem>>, %arg6: memref<1x128xf32, #tpu.memory_space<vmem>>, %arg7: memref<128x8xbf16, #tpu.memory_space<vmem>>, %arg8: memref<1x8xf32, #tpu.memory_space<vmem>>, %arg9: memref<8x256xf32, #tpu.memory_space<vmem>>, %arg10: memref<8x256xf32, #tpu.memory_space<vmem>>) attributes {dimension_semantics = [#tpu.dimension_semantics<arbitrary>], iteration_bounds = array<i64: 1>, scalar_prefetch = 0 : i64, scratch_operands = 0 : i64, tpu.core_type = #tpu.core_type<tc>, window_params = [{transform_indices = @transform_0, window_bounds = array<i64: 8, 32>}, {transform_indices = @transform_1, window_bounds = array<i64: 8, 32>}, {pipeline_mode = #tpu.pipeline_mode<synchronous>, transform_indices = @transform_2, window_bounds = array<i64: 32, 128>}, {pipeline_mode = #tpu.pipeline_mode<synchronous>, transform_indices = @transform_3, window_bounds = array<i64: 1, 128>}, {pipeline_mode = #tpu.pipeline_mode<synchronous>, transform_indices = @transform_4, window_bounds = array<i64: 128, 128>}, {pipeline_mode = #tpu.pipeline_mode<synchronous>, transform_indices = @transform_5, window_bounds = array<i64: 1, 128>}, {pipeline_mode = #tpu.pipeline_mode<synchronous>, transform_indices = @transform_6, window_bounds = array<i64: 128, 8>}, {pipeline_mode = #tpu.pipeline_mode<synchronous>, transform_indices = @transform_7, window_bounds = array<i64: 1, 8>}, {transform_indices = @transform_8, window_bounds = array<i64: 8, 256>}, {transform_indices = @transform_9, window_bounds = array<i64: 8, 256>}]} {
    %c0 = arith.constant 0 : index
    %c0_0 = arith.constant 0 : index
    %0 = vector.load %arg1[%c0, %c0_0] : memref<8x32xf32, #tpu.memory_space<vmem>>, vector<8x32xf32>
    %c0_1 = arith.constant 0 : index
    %c0_2 = arith.constant 0 : index
    %1 = vector.load %arg2[%c0_1, %c0_2] : memref<8x32xf32, #tpu.memory_space<vmem>>, vector<8x32xf32>
    %2 = tpu.concatenate %0, %1 in 0 : vector<8x32xf32>, vector<8x32xf32> -> vector<16x32xf32>
    %3 = arith.truncf %2 : vector<16x32xf32> to vector<16x32xbf16>
    %c0_3 = arith.constant 0 : index
    %c0_4 = arith.constant 0 : index
    %4 = vector.load %arg3[%c0_3, %c0_4] : memref<32x128xbf16, #tpu.memory_space<vmem>>, vector<32x128xbf16>
    %cst = arith.constant dense<0.000000e+00> : vector<16x128xf32>
    %5 = tpu.matmul %3, %4, %cst {dimension_numbers = #tpu.dot_dimension_numbers<[1], [0], [0], [1], [0, 0, 1, 1], [], []>} : vector<16x32xbf16>, vector<32x128xbf16>, vector<16x128xf32> -> vector<16x128xf32>
    %c0_5 = arith.constant 0 : index
    %c0_6 = arith.constant 0 : index
    %6 = vector.load %arg4[%c0_5, %c0_6] : memref<1x128xf32, #tpu.memory_space<vmem>>, vector<1x128xf32>
    %7 = vector.broadcast %6 : vector<1x128xf32> to vector<16x128xf32>
    %8 = arith.addf %5, %7 : vector<16x128xf32>
    %cst_7 = arith.constant 0.000000e+00 : f32
    %9 = vector.broadcast %cst_7 : f32 to vector<16x128xf32>
    %10 = arith.maximumf %8, %9 : vector<16x128xf32>
    %11 = arith.truncf %10 : vector<16x128xf32> to vector<16x128xbf16>
    %c0_8 = arith.constant 0 : index
    %c0_9 = arith.constant 0 : index
    %12 = vector.load %arg5[%c0_8, %c0_9] : memref<128x128xbf16, #tpu.memory_space<vmem>>, vector<128x128xbf16>
    %cst_10 = arith.constant dense<0.000000e+00> : vector<16x128xf32>
    %13 = tpu.matmul %11, %12, %cst_10 {dimension_numbers = #tpu.dot_dimension_numbers<[1], [0], [0], [1], [0, 0, 1, 1], [], []>} : vector<16x128xbf16>, vector<128x128xbf16>, vector<16x128xf32> -> vector<16x128xf32>
    %c0_11 = arith.constant 0 : index
    %c0_12 = arith.constant 0 : index
    %14 = vector.load %arg6[%c0_11, %c0_12] : memref<1x128xf32, #tpu.memory_space<vmem>>, vector<1x128xf32>
    %15 = vector.broadcast %14 : vector<1x128xf32> to vector<16x128xf32>
    %16 = arith.addf %13, %15 : vector<16x128xf32>
    %cst_13 = arith.constant 0.000000e+00 : f32
    %17 = vector.broadcast %cst_13 : f32 to vector<16x128xf32>
    %18 = arith.maximumf %16, %17 : vector<16x128xf32>
    %19 = arith.truncf %18 : vector<16x128xf32> to vector<16x128xbf16>
    %c0_14 = arith.constant 0 : index
    %c0_15 = arith.constant 0 : index
    %20 = vector.load %arg7[%c0_14, %c0_15] : memref<128x8xbf16, #tpu.memory_space<vmem>>, vector<128x8xbf16>
    %cst_16 = arith.constant dense<0.000000e+00> : vector<16x8xf32>
    %21 = tpu.matmul %19, %20, %cst_16 {dimension_numbers = #tpu.dot_dimension_numbers<[1], [0], [0], [1], [0, 0, 1, 1], [], []>} : vector<16x128xbf16>, vector<128x8xbf16>, vector<16x8xf32> -> vector<16x8xf32>
    %c0_17 = arith.constant 0 : index
    %c0_18 = arith.constant 0 : index
    %22 = vector.load %arg8[%c0_17, %c0_18] : memref<1x8xf32, #tpu.memory_space<vmem>>, vector<1x8xf32>
    %23 = vector.broadcast %22 : vector<1x8xf32> to vector<16x8xf32>
    %24 = arith.addf %21, %23 : vector<16x8xf32>
    %cst_19 = arith.constant dense<0xFF800000> : vector<16xf32>
    %25 = vector.multi_reduction <maximumf>, %24, %cst_19 [1] : vector<16x8xf32> to vector<16xf32>
    %26 = vector.shape_cast %25 : vector<16xf32> to vector<16x1xf32>
    %27 = vector.broadcast %26 : vector<16x1xf32> to vector<16x8xf32>
    %28 = arith.subf %24, %27 : vector<16x8xf32>
    %29 = math.exp %28 : vector<16x8xf32>
    %cst_20 = arith.constant dense<0.000000e+00> : vector<16xf32>
    %30 = vector.multi_reduction <add>, %29, %cst_20 [1] : vector<16x8xf32> to vector<16xf32>
    %31 = vector.shape_cast %30 : vector<16xf32> to vector<16x1xf32>
    %32 = math.log %31 : vector<16x1xf32>
    %33 = vector.broadcast %32 : vector<16x1xf32> to vector<16x8xf32>
    %34 = arith.subf %28, %33 : vector<16x8xf32>
    %35 = math.exp %34 : vector<16x8xf32>
    %cst_21 = arith.constant 0.000000e+00 : f32
    %36 = vector.broadcast %cst_21 : f32 to vector<16x120xf32>
    %37 = tpu.concatenate %35, %36, %34, %36 in 1 : vector<16x8xf32>, vector<16x120xf32>, vector<16x8xf32>, vector<16x120xf32> -> vector<16x256xf32>
    %38 = vector.extract_strided_slice %37 {offsets = [0, 0], sizes = [8, 256], strides = [1, 1]} : vector<16x256xf32> to vector<8x256xf32>
    %c0_22 = arith.constant 0 : index
    %c0_23 = arith.constant 0 : index
    %39 = vector.load %arg9[%c0_22, %c0_23] : memref<8x256xf32, #tpu.memory_space<vmem>>, vector<8x256xf32>
    tpu.vector_store %arg9[%c0_22, %c0_23], %38 {strides = array<i32>} : memref<8x256xf32, #tpu.memory_space<vmem>>, vector<8x256xf32>,
    %40 = vector.extract_strided_slice %37 {offsets = [8, 0], sizes = [8, 256], strides = [1, 1]} : vector<16x256xf32> to vector<8x256xf32>
    %c0_24 = arith.constant 0 : index
    %c0_25 = arith.constant 0 : index
    %41 = vector.load %arg10[%c0_24, %c0_25] : memref<8x256xf32, #tpu.memory_space<vmem>>, vector<8x256xf32>
    tpu.vector_store %arg10[%c0_24, %c0_25], %40 {strides = array<i32>} : memref<8x256xf32, #tpu.memory_space<vmem>>, vector<8x256xf32>,
    return
  }
  func.func @transform_0(%arg0: i32) -> (i32, i32) {
    %c0_i32 = arith.constant 0 : i32
    %c0_i32_0 = arith.constant 0 : i32
    return %arg0, %c0_i32 : i32, i32
  }
  func.func @transform_1(%arg0: i32) -> (i32, i32) {
    %c0_i32 = arith.constant 0 : i32
    %c0_i32_0 = arith.constant 0 : i32
    return %arg0, %c0_i32 : i32, i32
  }
  func.func @transform_2(%arg0: i32) -> (i32, i32) {
    %c0_i32 = arith.constant 0 : i32
    %c0_i32_0 = arith.constant 0 : i32
    %c0_i32_1 = arith.constant 0 : i32
    return %c0_i32, %c0_i32_0 : i32, i32
  }
  func.func @transform_3(%arg0: i32) -> (i32, i32) {
    %c0_i32 = arith.constant 0 : i32
    %c0_i32_0 = arith.constant 0 : i32
    %c0_i32_1 = arith.constant 0 : i32
    return %c0_i32, %c0_i32_0 : i32, i32
  }
  func.func @transform_4(%arg0: i32) -> (i32, i32) {
    %c0_i32 = arith.constant 0 : i32
    %c0_i32_0 = arith.constant 0 : i32
    %c0_i32_1 = arith.constant 0 : i32
    return %c0_i32, %c0_i32_0 : i32, i32
  }
  func.func @transform_5(%arg0: i32) -> (i32, i32) {
    %c0_i32 = arith.constant 0 : i32
    %c0_i32_0 = arith.constant 0 : i32
    %c0_i32_1 = arith.constant 0 : i32
    return %c0_i32, %c0_i32_0 : i32, i32
  }
  func.func @transform_6(%arg0: i32) -> (i32, i32) {
    %c0_i32 = arith.constant 0 : i32
    %c0_i32_0 = arith.constant 0 : i32
    %c0_i32_1 = arith.constant 0 : i32
    return %c0_i32, %c0_i32_0 : i32, i32
  }
  func.func @transform_7(%arg0: i32) -> (i32, i32) {
    %c0_i32 = arith.constant 0 : i32
    %c0_i32_0 = arith.constant 0 : i32
    %c0_i32_1 = arith.constant 0 : i32
    return %c0_i32, %c0_i32_0 : i32, i32
  }
  func.func @transform_8(%arg0: i32) -> (i32, i32) {
    %c0_i32 = arith.constant 0 : i32
    %c0_i32_0 = arith.constant 0 : i32
    return %arg0, %c0_i32 : i32, i32
  }
  func.func @transform_9(%arg0: i32) -> (i32, i32) {
    %c0_i32 = arith.constant 0 : i32
    %c0_i32_0 = arith.constant 0 : i32
    return %arg0, %c0_i32 : i32, i32
  }
}

</mosaic_0001>

<bundles_post_ra>
// kernel: tpu_custom_call.1
= control target key start
LH: loop header
LB: loop body
LE: loop exit
PB: predicated region body
PF: predicated region fallthrough
CT: control target
= control target key end

     0   :  { %15 = vsyncpa [#allocation3], 0  ;;  %s848_s0 = inlined_call_operand.hbm [shape: f32[8,32], index: 0, kind: input, shape index: {}]   ;;  %s849_s1 = inlined_call_operand.hbm [shape: f32[8,32], index: 1, kind: input, shape index: {}]   ;;  %s850_s2 = inlined_call_operand.vmem [shape: bf16[32,128], index: 2, kind: input, shape index: {}]   ;;  %s851_s3 = inlined_call_operand.vmem [shape: f32[1,128], index: 3, kind: input, shape index: {}]   ;;  %s852_s4 = inlined_call_operand.vmem [shape: bf16[128,128], index: 4, kind: input, shape index: {}]   ;;  %s853_s5 = inlined_call_operand.vmem [shape: f32[1,128], index: 5, kind: input, shape index: {}]   ;;  %s854_s6 = inlined_call_operand.vmem [shape: bf16[128,8], index: 6, kind: input, shape index: {}]   ;;  %s855_s7 = inlined_call_operand.vmem [shape: f32[1,8], index: 7, kind: input, shape index: {}]   ;;  %s856_s8 = inlined_call_operand.hbm [shape: f32[8,256], index: 8, kind: output, shape index: {0}]   ;;  %s857_s9 = inlined_call_operand.hbm [shape: f32[8,256], index: 9, kind: output, shape index: {1}]  }
   0x1   :  { %16 = vsyncpa [#allocation6], 0 }
   0x2   :  { %17 = vsyncpa [#allocation4], 0 }
   0x3   :  { %18 = vsyncpa [#allocation9], 0  ;;  %s649_s30 = smov [#allocation2]   ;;  %s650_s11 = smov [#allocation5]  }
   0x4   :  { %s25_s10 = sshll.u32 %s649_s30, 4  ;;  %s35_s12 = sshll.u32 %s650_s11, 4  ;;  %s26_s10 = int_to_ptr.vmem [resolvable:$true] %s25_s10  ;;  %s36_s12 = int_to_ptr.vmem [resolvable:$true] %s35_s12 }
   0x5   :  { %s553_s15 = scalar_lea.hbm %s848_s0, 128 }
   0x6   :  { %p554_p0 = scmp.ne.s32.totalorder %s848_s0, %s553_s15  ;;  %p557_p1 = scmp.lt.u32.totalorder %s553_s15, %s848_s0 }
   0x8   :  { %p559_p2 = pnand %p557_p1, %p554_p0 }
   0xa   :  { %562 = shalt.err (!%p559_p2)
}
   0xb   :  { %s563_s20 = scalar_lea.vmem %s26_s10, 128  ;;  %p568_p4 = scmp.lt.s32.totalorder %s26_s10, %s26_s10 }
   0xc   :  { %p564_p3 = scmp.ne.s32.totalorder %s26_s10, %s563_s20  ;;  %p569_p5 = scmp.lt.s32.totalorder %s563_s20, %s563_s20 }
   0xe   :  { %p570_p6 = por %p569_p5, %p568_p4 }
  0x10   :  { %p571_p7 = pnand %p570_p6, %p564_p3 }
  0x12   :  { %574 = shalt.err (!%p571_p7)
}
  0x13   :  { %28 = dma.hbm_to_vmem [thread:$0]  %s848_s0, 128, %s26_s10, [#allocation3]  }
  0x14   :  { %s575_s25 = scalar_lea.hbm %s849_s1, 128 }
  0x15   :  { %p576_p8 = scmp.ne.s32.totalorder %s849_s1, %s575_s25  ;;  %p579_p9 = scmp.lt.u32.totalorder %s575_s25, %s849_s1 }
  0x17   :  { %p581_p10 = pnand %p579_p9, %p576_p8 }
  0x19   :  { %584 = shalt.err (!%p581_p10)
}
  0x1a   :  { %s585_s30 = scalar_lea.vmem %s36_s12, 128  ;;  %p590_p12 = scmp.lt.s32.totalorder %s36_s12, %s36_s12 }
  0x1b   :  { %p586_p11 = scmp.ne.s32.totalorder %s36_s12, %s585_s30  ;;  %p591_p13 = scmp.lt.s32.totalorder %s585_s30, %s585_s30 }
  0x1d   :  { %p592_p0 = por %p591_p13, %p590_p12 }
  0x1f   :  { %p593_p1 = pnand %p592_p0, %p586_p11 }
  0x21   :  { %596 = shalt.err (!%p593_p1)
}
  0x22   :  { %38 = dma.hbm_to_vmem [thread:$0]  %s849_s1, 128, %s36_s12, [#allocation6]  }
  0x23   :  { %641 = dma.done.wait [#allocation3], 128  }
  0x24   :  { %642 = vsyncadd [#allocation3], 4294967168 }
  0x25   :  { %643 = dma.done.wait [#allocation6], 128  }
  0x26   :  { %644 = vsyncadd [#allocation6], 4294967168  ;;  %v651_v0 = vmov 0.0   ;;  %vm652_vm0 = vmmov 0   ;;  %v523_v1 = vld [vmem:[%s850_s2] sm:$0xff]   ;;  %v524_v2 = vld [vmem:[%s850_s2 + $0x8] sm:$0xff]  }
  0x27   :  { %469 = vmatprep.subr.bf16.mxu0 %v651_v0  ;;  %473 = vmatprep.mubr.msk.bf16.mxu0 %vm652_vm0, %v651_v0  ;;  %v58_v3 = vld [vmem:[#allocation2] sm:$0xff]  ;;  %v59_v4 = vld [vmem:[#allocation5] sm:$0xff]  ;;  %vm84_vm1 = vcmask 261120   ;;  %v527_v8 = vld [vmem:[%s852_s4 + $0x10] sm:$0xff]   ;;  %vm359_vm2 = vcmask 64512  }
  0x28   :  { %477 = vmatprep.subr.bf16.mxu1 %v651_v0  ;;  %493 = vmatprep.mubr.msk.bf16.mxu1 %vm652_vm0, %v651_v0  ;;  %v525_v5 = vld [vmem:[%s852_s4] sm:$0xff]   ;;  %v60_v6 = vpack.c.bf16 %v59_v4, %v58_v3  ;;  %v526_v7 = vld [vmem:[%s852_s4 + $0x8] sm:$0xff]   ;;  %v528_v9 = vld [vmem:[%s852_s4 + $0x18] sm:$0xff]  }
  0x29   :  { %470 = vmatpush3.bf16.msra.mxu0 %v523_v1  ;;  %478 = vmatpush3.bf16.msra.mxu1 %v525_v5  ;;  %v529_v10 = vld [vmem:[%s852_s4 + $0x20] sm:$0xff]   ;;  %v530_v11 = vld [vmem:[%s852_s4 + $0x28] sm:$0xff]   ;;  %v531_v12 = vld [vmem:[%s852_s4 + $0x30] sm:$0xff]  }
  0x2a   :  { %471 = vmatprep.subr.bf16.mxu0 %v651_v0  ;;  %479 = vmatprep.subr.bf16.mxu1 %v651_v0  ;;  %v532_v13 = vld [vmem:[%s852_s4 + $0x38] sm:$0xff]   ;;  %v533_v14 = vld [vmem:[%s854_s6] sm:$0xff]   ;;  %v534_v15 = vld [vmem:[%s854_s6 + $0x8] sm:$0xff]  }
  0x2b   :  { %v535_v16 = vld [vmem:[%s854_s6 + $0x10] sm:$0xff]   ;;  %v536_v17 = vld [vmem:[%s854_s6 + $0x18] sm:$0xff]   ;;  %v537_v18 = vld [vmem:[%s854_s6 + $0x20] sm:$0xff]  }
  0x2c   :  { %v538_v19 = vld [vmem:[%s854_s6 + $0x28] sm:$0xff]   ;;  %v426_v20 = vld [vmem:[%s851_s3] ss:$0 sm:$0xff]  ;;  %v539_v30 = vld [vmem:[%s854_s6 + $0x30] sm:$0xff]  }
  0x2d   :  { %472 = vmatpush3.bf16.msra.mxu0 %v524_v2  ;;  %480 = vmatpush3.bf16.msra.mxu1 %v526_v7  ;;  %v540_v31 = vld [vmem:[%s854_s6 + $0x38] sm:$0xff]   ;;  %v430_v32 = vld [vmem:[%s853_s5] ss:$0 sm:$0xff]  ;;  %s653_s5 = smov [#allocation7]  }
  0x2e   :  { %497 = vmatprep.subr.bf16.mxu0 %v651_v0  ;;  %481 = vmatprep.subr.bf16.mxu1 %v651_v0  ;;  %v439_v42 = vld [vmem:[%s855_s7] ss:$0 sm:$0xff]  ;;  %s402_s6 = sshll.u32 %s653_s5, 4  ;;  %s654_s7 = smov [#allocation8]   ;;  %s403_s6 = int_to_ptr.vmem [resolvable:$true] %s402_s6 }
  0x2f   :  { %s412_s25 = sshll.u32 %s654_s7, 4  ;;  %s597_s26 = scalar_lea.vmem %s403_s6, 256  ;;  %s413_s25 = int_to_ptr.vmem [resolvable:$true] %s412_s25 }
  0x30   :  { %474 = vmatmul.mubr.msk.bf16.vlgmr.msra.gmra.mrb[0].mxu0 %vm84_vm1, %v60_v6  ;;  %p598_p2 = scmp.ne.s32.totalorder %s403_s6, %s597_s26  ;;  %p602_p3 = scmp.lt.s32.totalorder %s403_s6, %s403_s6 }
  0x31   :  { %513 = vmatprep.mubr.msk.bf16.mxu0 %vm652_vm0, %v651_v0  ;;  %482 = vmatpush3.bf16.msra.mxu1 %v527_v8  ;;  %p603_p4 = scmp.lt.s32.totalorder %s597_s26, %s597_s26 }
  0x32   :  { %483 = vmatprep.subr.bf16.mxu1 %v651_v0  ;;  %498 = vmatpush3.bf16.msra.mxu0 %v533_v14 }
  0x33   :  { %499 = vmatprep.subr.bf16.mxu0 %v651_v0  ;;  %p604_p5 = por %p603_p4, %p602_p3 }
  0x35   :  { %484 = vmatpush3.bf16.msra.mxu1 %v528_v9  ;;  %p605_p6 = pnand %p604_p5, %p598_p2 }
  0x36   :  { %485 = vmatprep.subr.bf16.mxu1 %v651_v0  ;;  %500 = vmatpush3.bf16.msra.mxu0 %v534_v15 }
  0x37   :  { %501 = vmatprep.subr.bf16.mxu0 %v651_v0 }
  0x39   :  { %486 = vmatpush3.bf16.msra.mxu1 %v529_v10 }
  0x3a   :  { %487 = vmatprep.subr.bf16.mxu1 %v651_v0  ;;  %502 = vmatpush3.bf16.msra.mxu0 %v535_v16 }
  0x3b   :  { %503 = vmatprep.subr.bf16.mxu0 %v651_v0 }
  0x3d   :  { %488 = vmatpush3.bf16.msra.mxu1 %v530_v11 }
  0x3e   :  { %489 = vmatprep.subr.bf16.mxu1 %v651_v0  ;;  %504 = vmatpush3.bf16.msra.mxu0 %v536_v17 }
  0x3f   :  { %505 = vmatprep.subr.bf16.mxu0 %v651_v0 }
  0x41   :  { %490 = vmatpush3.bf16.msra.mxu1 %v531_v12 }
  0x42   :  { %491 = vmatprep.subr.bf16.mxu1 %v651_v0  ;;  %506 = vmatpush3.bf16.msra.mxu0 %v537_v18 }
  0x43   :  { %507 = vmatprep.subr.bf16.mxu0 %v651_v0 }
  0x45   :  { %492 = vmatpush3.bf16.msra.mxu1 %v532_v13 }
  0x46   :  { %508 = vmatpush3.bf16.msra.mxu0 %v538_v19 }
  0x47   :  { %509 = vmatprep.subr.bf16.mxu0 %v651_v0 }
  0x4a   :  { %510 = vmatpush3.bf16.msra.mxu0 %v539_v30 }
  0x4b   :  { %511 = vmatprep.subr.bf16.mxu0 %v651_v0 }
  0x4e   :  { %512 = vmatpush3.bf16.msra.mxu0 %v540_v31 }
 0x103   :  { %v122_v21 = vpop.f32.mrb[0].mxu0 }
 0x104   :  { %v123_v22 = vadd.f32 %v426_v20, %v122_v21  ;;  %v475_v23 = vpop.f32.mrb[1].mxu0 }
 0x105   :  { %v125_v24 = vpop.f32.mrb[2].mxu0 }
 0x106   :  { %v126_v25 = vadd.f32 %v426_v20, %v125_v24  ;;  %v476_v26 = vpop.f32.mrb[3].mxu0  ;;  %v129_v27 = vmax.f32 %v123_v22, 0.0 }
 0x108   :  { %v130_v28 = vmax.f32 %v126_v25, 0.0 }
 0x10a   :  { %v131_v29 = vpack.c.bf16 %v130_v28, %v129_v27 }
 0x10c   :  { %494 = vmatmul.mubr.bf16.vlgmr.msra.gmra.mrb[0].mxu1 %v131_v29 }
 0x1df   :  { %v237_v33 = vpop.f32.mrb[0].mxu1 }
 0x1e0   :  { %v238_v34 = vadd.f32 %v430_v32, %v237_v33  ;;  %v495_v35 = vpop.f32.mrb[1].mxu1 }
 0x1e1   :  { %v240_v36 = vpop.f32.mrb[2].mxu1 }
 0x1e2   :  { %v241_v37 = vadd.f32 %v430_v32, %v240_v36  ;;  %v496_v38 = vpop.f32.mrb[3].mxu1  ;;  %v244_v39 = vmax.f32 %v238_v34, 0.0 }
 0x1e4   :  { %v245_v40 = vmax.f32 %v241_v37, 0.0 }
 0x1e6   :  { %v246_v41 = vpack.c.bf16 %v245_v40, %v244_v39 }
 0x1e8   :  { %514 = vmatmul.mubr.bf16.vlgmr.msra.gmra.mrb[4].mxu0 %v246_v41 }
 0x2bb   :  { %v352_v43 = vpop.f32.mrb[4].mxu0 }
 0x2bc   :  { %v353_v44 = vadd.f32 %v439_v42, %v352_v43  ;;  %v515_v45 = vpop.f32.mrb[5].mxu0 }
 0x2bd   :  { %v355_v46 = vpop.f32.mrb[6].mxu0 }
 0x2be   :  { %v356_v47 = vadd.f32 %v439_v42, %v355_v46  ;;  %v516_v48 = vpop.f32.mrb[7].mxu0  ;;  %v360_v49 = vsel %vm359_vm2, %v353_v44, -inf }
 0x2bf   :  { %361 = vmax.xlane.f32.xlu0 %v360_v49 }
 0x2c0   :  { %v363_v50 = vsel %vm359_vm2, %v356_v47, -inf }
 0x2c3   :  { %364 = vmax.xlane.f32.xlu0 %v363_v50 }
 0x34c   :  { %v362_v51 = vpop.xlane.xlu0 %361 }
 0x34d   :  { %v366_v52 = vsub.f32 %v353_v44, %v362_v51 }
 0x34f   :  { %v368_v53 = vmul.f32 1.442695, %v366_v52 }
 0x350   :  { %v365_v54 = vpop.xlane.xlu0 %364 }
 0x351   :  { %541 = vpow2.f32 %v368_v53  ;;  %v367_v55 = vsub.f32 %v356_v47, %v365_v54 }
 0x353   :  { %v370_v56 = vmul.f32 1.442695, %v367_v55 }
 0x355   :  { %543 = vpow2.f32 %v370_v56 }
 0x35b   :  { %v542_v57 = vpop.eup %541 }
 0x35c   :  { %v372_v58 = vsel %vm359_vm2, %v542_v57, 0.0 }
 0x35d   :  { %373 = vadd.xlane.f32.xlu1 %v372_v58 }
 0x35f   :  { %v544_v59 = vpop.eup %543 }
 0x360   :  { %v375_v60 = vsel %vm359_vm2, %v544_v59, 0.0 }
 0x361   :  { %376 = vadd.xlane.f32.xlu1 %v375_v60 }
 0x3ea   :  { %v374_v61 = vpop.xlane.xlu1 %373 }
 0x3eb   :  { %545 = vlog2.f32 %v374_v61 }
 0x3ee   :  { %v377_v62 = vpop.xlane.xlu1 %376 }
 0x3ef   :  { %547 = vlog2.f32 %v377_v62 }
 0x3f5   :  { %v546_v63 = vpop.eup %545 }
 0x3f6   :  { %v379_v0 = vmul.f32 0.6931472, %v546_v63 }
 0x3f8   :  { %v382_v1 = vsub.f32 %v366_v52, %v379_v0 }
 0x3f9   :  { %v548_v2 = vpop.eup %547 }
 0x3fa   :  { %v384_v3 = vmul.f32 1.442695, %v382_v1  ;;  %v381_v4 = vmul.f32 0.6931472, %v548_v2  ;;  %v390_v5 = vsel %vm359_vm2, %v382_v1, 0.0 }
 0x3fb   :  { %393 = vst [vmem:[#allocation7 + $0x8] sm:$0xff] %v390_v5 }
 0x3fc   :  { %549 = vpow2.f32 %v384_v3  ;;  %v383_v6 = vsub.f32 %v367_v55, %v381_v4 }
 0x3fe   :  { %v386_v7 = vmul.f32 1.442695, %v383_v6  ;;  %v391_v8 = vsel %vm359_vm2, %v383_v6, 0.0 }
 0x3ff   :  { %395 = vst [vmem:[#allocation8 + $0x8] sm:$0xff] %v391_v8 }
 0x400   :  { %551 = vpow2.f32 %v386_v7 }
 0x406   :  { %v550_v9 = vpop.eup %549 }
 0x407   :  { %v388_v10 = vsel %vm359_vm2, %v550_v9, 0.0 }
 0x408   :  { %392 = vst [vmem:[#allocation7] sm:$0xff] %v388_v10 }
 0x409   :  { %608 = shalt.err (!%p605_p6)
}
 0x40a   :  { %s609_s29 = scalar_lea.hbm %s856_s8, 256 }
 0x40b   :  { %p610_p7 = scmp.ne.s32.totalorder %s856_s8, %s609_s29  ;;  %p613_p8 = scmp.lt.u32.totalorder %s609_s29, %s856_s8 }
 0x40d   :  { %p615_p9 = pnand %p613_p8, %p610_p7 }
 0x40f   :  { %618 = shalt.err (!%p615_p9)
}
 0x410   :  { %405 = dma.vmem_to_hbm [thread:$0]  %s403_s6, 256, %s856_s8, [#allocation4]   ;;  %v552_v11 = vpop.eup %551 }
 0x411   :  { %v389_v12 = vsel %vm359_vm2, %v552_v11, 0.0  ;;  %s619_s1 = scalar_lea.vmem %s413_s25, 256  ;;  %p624_p11 = scmp.lt.s32.totalorder %s413_s25, %s413_s25 }
 0x412   :  { %394 = vst [vmem:[#allocation8] sm:$0xff] %v389_v12  ;;  %p620_p10 = scmp.ne.s32.totalorder %s413_s25, %s619_s1  ;;  %p625_p12 = scmp.lt.s32.totalorder %s619_s1, %s619_s1 }
 0x414   :  { %p626_p13 = por %p625_p12, %p624_p11 }
 0x416   :  { %p627_p0 = pnand %p626_p13, %p620_p10 }
 0x418   :  { %630 = shalt.err (!%p627_p0)
}
 0x419   :  { %s631_s15 = scalar_lea.hbm %s857_s9, 256 }
 0x41a   :  { %p632_p1 = scmp.ne.s32.totalorder %s857_s9, %s631_s15  ;;  %p635_p2 = scmp.lt.u32.totalorder %s631_s15, %s857_s9 }
 0x41c   :  { %p637_p3 = pnand %p635_p2, %p632_p1 }
 0x41e   :  { %640 = shalt.err (!%p637_p3)
}
 0x41f   :  { %415 = dma.vmem_to_hbm [thread:$0]  %s413_s25, 256, %s857_s9, [#allocation9]  }
 0x420   :  { %645 = dma.done.wait [#allocation4], 256  }
 0x421   :  { %646 = vsyncadd [#allocation4], 4294967040 }
 0x422   :  { %647 = dma.done.wait [#allocation9], 256  }
 0x423   :  { %648 = vsyncadd [#allocation9], 4294967040 }
 0x424   :  { %422 = vsyncpa [#allocation3], 1 }
 0x425   :  { %423 = vsyncpa [#allocation6], 1 }
 0x426   :  { %424 = vsyncpa [#allocation4], 1 }
 0x427   :  { %425 = vsyncpa [#allocation9], 1 }

</bundles_post_ra>
